<compile_context>
chip_gen: v7x
topology: tpu7x:2x2x1
jax: 0.10.0
libtpu: 0.0.40
codegen_flags: <defaults>
</compile_context>

<pallas_src>
import jax
import jax.numpy as jnp
from jax.experimental import pallas as pl
from jax.experimental.pallas import tpu as pltpu


def planar_flow_kernel(x_ref, u_ref, w_ref, b_ref, xo_ref, ld_ref):
    # Load tile & params; compute in f32 regardless of I/O dtype.
    x = x_ref[...].astype(jnp.float32)   # (TB, D)
    u = u_ref[...].astype(jnp.float32)   # (1, D)
    w = w_ref[...].astype(jnp.float32)   # (1, D)
    b = b_ref[...].astype(jnp.float32)   # (1, 1)

    # u_hat = u + (m(inner) - inner) * w / ||w||^2, m(z) = softplus(z) - 1
    inner = jnp.sum(w * u, axis=1, keepdims=True)        # (1, 1)
    m_inner = jnp.logaddexp(inner, 0.0) - 1.0            # softplus(inner) - 1
    w_norm_sq = jnp.sum(w * w, axis=1, keepdims=True)    # (1, 1)
    u_hat = u + (m_inner - inner) * w / w_norm_sq        # (1, D)

    # activation = (w * x).sum(dim=1, keepdim=True) + b
    activation = jnp.sum(w * x, axis=1, keepdims=True) + b   # (TB, 1)
    h = jnp.tanh(activation)                                 # (TB, 1)

    # x_out = x + u_hat * h(activation)
    xo_ref[...] = (x + u_hat * h).astype(xo_ref.dtype)       # (TB, D)

    # log_det = log|1 + (u_hat . psi)| with psi = h'(act) * w.
    # (u_hat . w) == softplus(inner) - 1 == m_inner (scalar), so this collapses
    # to log1p(h' * m_inner); the determinant is > 0 by construction.
    h_prime = 1.0 - h * h                                    # (TB, 1)
    ld_ref[...] = jnp.log1p(h_prime * m_inner)               # (TB, 1)


def planar_flow(x, u, w, b, *, block_b=512):
    """x: (B, D); u, w: (1, D); b: (1,).

    Returns (x_out (B, D) in x.dtype, log_det (B, 1) f32).
    """
    B, D = x.shape
    TB = B if B <= block_b else block_b      # full batch, or 512-row tiles (mult. of 8)
    grid = (pl.cdiv(B, TB),)

    b2 = jnp.reshape(b, (1, 1))
    itemsize = jnp.dtype(x.dtype).itemsize
    cost = pl.CostEstimate(
        flops=6 * B * D,
        transcendentals=2 * B,
        bytes_accessed=2 * B * D * itemsize + 4 * B + 2 * (2 * D + 1) * 4,
    )

    out_shapes = (
        jax.ShapeDtypeStruct((B, D), x.dtype),
        jax.ShapeDtypeStruct((B, 1), jnp.float32),
    )
    return pl.pallas_call(
        planar_flow_kernel,
        out_shape=out_shapes,
        grid=grid,
        in_specs=[
            pl.BlockSpec((TB, D), lambda i: (i, 0)),   # x tile (pipelined)
            pl.BlockSpec((1, D), lambda i: (0, 0)),    # u (VMEM-resident)
            pl.BlockSpec((1, D), lambda i: (0, 0)),    # w (VMEM-resident)
            pl.BlockSpec((1, 1), lambda i: (0, 0)),    # b (VMEM-resident)
        ],
        out_specs=(
            pl.BlockSpec((TB, D), lambda i: (i, 0)),
            pl.BlockSpec((TB, 1), lambda i: (i, 0)),
        ),
        compiler_params=pltpu.CompilerParams(
            dimension_semantics=("parallel",),        # shard batch tiles on v7x's 2 TCs
            vmem_limit_bytes=32 * 1024 * 1024,
        ),
        cost_estimate=cost,
    )(x, u, w, b2)


def planar_flow_ref(x, u, w, b):
    """Pure-JAX reference mirroring the PyTorch forward exactly."""
    x = x.astype(jnp.float32)
    u = u.astype(jnp.float32)
    w = w.astype(jnp.float32)
    b = b.astype(jnp.float32)
    inner = jnp.sum(w * u)
    m_inner = jax.nn.softplus(inner) - 1.0
    u_hat = u + (m_inner - inner) * w / jnp.sum(w * w)
    activation = jnp.sum(w * x, axis=1, keepdims=True) + b
    h = jnp.tanh(activation)
    x_out = x + u_hat * h
    psi = (1.0 - h * h) * w
    log_det = jnp.log(jnp.abs(1.0 + jnp.sum(u_hat * psi, axis=1, keepdims=True)))
    return x_out, log_det


if __name__ == "__main__":
    key = jax.random.PRNGKey(0)
    kx, ku, kw, kb = jax.random.split(key, 4)

    B, D = 8, 32  # small shapes consistent with forward: x is (B, D)
    x = jax.random.normal(kx, (B, D), dtype=jnp.float32)
    u = jax.random.normal(ku, (1, D), dtype=jnp.float32)
    w = jax.random.normal(kw, (1, D), dtype=jnp.float32)
    b = jax.random.normal(kb, (1,), dtype=jnp.float32)

    x_out, log_det = planar_flow(x, u, w, b)
    jax.block_until_ready((x_out, log_det))

    x_exp, ld_exp = planar_flow_ref(x, u, w, b)
    assert jnp.allclose(x_out, x_exp, atol=1e-4, rtol=1e-4)
    assert jnp.allclose(log_det, ld_exp, atol=1e-4, rtol=1e-4)

    print("KERNEL_OK")
</pallas_src>

<mosaic_0001>
module attributes {stable_mosaic.version = 11 : i64} {
  func.func @planar_flow_kernel(%arg0: i32, %arg1: memref<8x32xf32, #tpu.memory_space<vmem>>, %arg2: memref<1x32xf32, #tpu.memory_space<vmem>>, %arg3: memref<1x32xf32, #tpu.memory_space<vmem>>, %arg4: memref<1x1xf32, #tpu.memory_space<vmem>>, %arg5: memref<8x32xf32, #tpu.memory_space<vmem>>, %arg6: memref<8x1xf32, #tpu.memory_space<vmem>>) attributes {dimension_semantics = [#tpu.dimension_semantics<parallel>], iteration_bounds = array<i64: 1>, scalar_prefetch = 0 : i64, scratch_operands = 0 : i64, tpu.core_type = #tpu.core_type<tc>, window_params = [{transform_indices = @transform_0, window_bounds = array<i64: 8, 32>}, {pipeline_mode = #tpu.pipeline_mode<synchronous>, transform_indices = @transform_1, window_bounds = array<i64: 1, 32>}, {pipeline_mode = #tpu.pipeline_mode<synchronous>, transform_indices = @transform_2, window_bounds = array<i64: 1, 32>}, {pipeline_mode = #tpu.pipeline_mode<synchronous>, transform_indices = @transform_3, window_bounds = array<i64: 1, 1>}, {transform_indices = @transform_4, window_bounds = array<i64: 8, 32>}, {transform_indices = @transform_5, window_bounds = array<i64: 8, 1>}]} {
    %c0 = arith.constant 0 : index
    %c0_0 = arith.constant 0 : index
    %0 = vector.load %arg1[%c0, %c0_0] : memref<8x32xf32, #tpu.memory_space<vmem>>, vector<8x32xf32>
    %c0_1 = arith.constant 0 : index
    %c0_2 = arith.constant 0 : index
    %1 = vector.load %arg2[%c0_1, %c0_2] : memref<1x32xf32, #tpu.memory_space<vmem>>, vector<1x32xf32>
    %c0_3 = arith.constant 0 : index
    %c0_4 = arith.constant 0 : index
    %2 = vector.load %arg3[%c0_3, %c0_4] : memref<1x32xf32, #tpu.memory_space<vmem>>, vector<1x32xf32>
    %c0_5 = arith.constant 0 : index
    %c0_6 = arith.constant 0 : index
    %3 = vector.load %arg4[%c0_5, %c0_6] : memref<1x1xf32, #tpu.memory_space<vmem>>, vector<1x1xf32>
    %4 = arith.mulf %2, %1 : vector<1x32xf32>
    %cst = arith.constant dense<0.000000e+00> : vector<1xf32>
    %5 = vector.multi_reduction <add>, %4, %cst [1] : vector<1x32xf32> to vector<1xf32>
    %6 = vector.shape_cast %5 : vector<1xf32> to vector<1x1xf32>
    %cst_7 = arith.constant 0.000000e+00 : f32
    %7 = vector.broadcast %cst_7 : f32 to vector<1x1xf32>
    %8 = arith.maximumf %6, %7 : vector<1x1xf32>
    %9 = vector.broadcast %cst_7 : f32 to vector<1x1xf32>
    %10 = arith.subf %6, %9 : vector<1x1xf32>
    %11 = arith.cmpf one, %10, %10 : vector<1x1xf32>
    %12 = vector.broadcast %cst_7 : f32 to vector<1x1xf32>
    %13 = arith.addf %6, %12 : vector<1x1xf32>
    %14 = math.absf %10 : vector<1x1xf32>
    %cst_8 = arith.constant 0.000000e+00 : f32
    %15 = vector.broadcast %cst_8 : f32 to vector<1x1xf32>
    %16 = arith.subf %15, %14 : vector<1x1xf32>
    %17 = math.exp %16 : vector<1x1xf32>
    %18 = math.log1p %17 : vector<1x1xf32>
    %19 = arith.addf %8, %18 : vector<1x1xf32>
    %20 = arith.select %11, %13, %19 : vector<1x1xi1>, vector<1x1xf32>
    %cst_9 = arith.constant 1.000000e+00 : f32
    %21 = vector.broadcast %cst_9 : f32 to vector<1x1xf32>
    %22 = arith.subf %20, %21 : vector<1x1xf32>
    %23 = arith.mulf %2, %2 : vector<1x32xf32>
    %cst_10 = arith.constant dense<0.000000e+00> : vector<1xf32>
    %24 = vector.multi_reduction <add>, %23, %cst_10 [1] : vector<1x32xf32> to vector<1xf32>
    %25 = vector.shape_cast %24 : vector<1xf32> to vector<1x1xf32>
    %26 = arith.subf %22, %6 : vector<1x1xf32>
    %27 = vector.broadcast %26 : vector<1x1xf32> to vector<1x32xf32>
    %28 = arith.mulf %27, %2 : vector<1x32xf32>
    %29 = vector.broadcast %25 : vector<1x1xf32> to vector<1x32xf32>
    %30 = arith.divf %28, %29 : vector<1x32xf32>
    %31 = arith.addf %1, %30 : vector<1x32xf32>
    %32 = vector.broadcast %2 : vector<1x32xf32> to vector<8x32xf32>
    %33 = arith.mulf %32, %0 : vector<8x32xf32>
    %cst_11 = arith.constant dense<0.000000e+00> : vector<8xf32>
    %34 = vector.multi_reduction <add>, %33, %cst_11 [1] : vector<8x32xf32> to vector<8xf32>
    %35 = vector.shape_cast %34 : vector<8xf32> to vector<8x1xf32>
    %36 = vector.broadcast %3 : vector<1x1xf32> to vector<8x1xf32>
    %37 = arith.addf %35, %36 : vector<8x1xf32>
    %38 = math.tanh %37 : vector<8x1xf32>
    %39 = vector.broadcast %31 : vector<1x32xf32> to vector<8x32xf32>
    %40 = vector.broadcast %38 : vector<8x1xf32> to vector<8x32xf32>
    %41 = arith.mulf %39, %40 : vector<8x32xf32>
    %42 = arith.addf %0, %41 : vector<8x32xf32>
    %c0_12 = arith.constant 0 : index
    %c0_13 = arith.constant 0 : index
    %43 = vector.load %arg5[%c0_12, %c0_13] : memref<8x32xf32, #tpu.memory_space<vmem>>, vector<8x32xf32>
    tpu.vector_store %arg5[%c0_12, %c0_13], %42 {strides = array<i32>} : memref<8x32xf32, #tpu.memory_space<vmem>>, vector<8x32xf32>,
    %44 = arith.mulf %38, %38 : vector<8x1xf32>
    %cst_14 = arith.constant 1.000000e+00 : f32
    %45 = vector.broadcast %cst_14 : f32 to vector<8x1xf32>
    %46 = arith.subf %45, %44 : vector<8x1xf32>
    %47 = vector.broadcast %22 : vector<1x1xf32> to vector<8x1xf32>
    %48 = arith.mulf %46, %47 : vector<8x1xf32>
    %49 = math.log1p %48 : vector<8x1xf32>
    %c0_15 = arith.constant 0 : index
    %c0_16 = arith.constant 0 : index
    %50 = vector.load %arg6[%c0_15, %c0_16] : memref<8x1xf32, #tpu.memory_space<vmem>>, vector<8x1xf32>
    tpu.vector_store %arg6[%c0_15, %c0_16], %49 {strides = array<i32>} : memref<8x1xf32, #tpu.memory_space<vmem>>, vector<8x1xf32>,
    return
  }
  func.func @transform_0(%arg0: i32) -> (i32, i32) {
    %c0_i32 = arith.constant 0 : i32
    %c0_i32_0 = arith.constant 0 : i32
    return %arg0, %c0_i32 : i32, i32
  }
  func.func @transform_1(%arg0: i32) -> (i32, i32) {
    %c0_i32 = arith.constant 0 : i32
    %c0_i32_0 = arith.constant 0 : i32
    %c0_i32_1 = arith.constant 0 : i32
    return %c0_i32, %c0_i32_0 : i32, i32
  }
  func.func @transform_2(%arg0: i32) -> (i32, i32) {
    %c0_i32 = arith.constant 0 : i32
    %c0_i32_0 = arith.constant 0 : i32
    %c0_i32_1 = arith.constant 0 : i32
    return %c0_i32, %c0_i32_0 : i32, i32
  }
  func.func @transform_3(%arg0: i32) -> (i32, i32) {
    %c0_i32 = arith.constant 0 : i32
    %c0_i32_0 = arith.constant 0 : i32
    %c0_i32_1 = arith.constant 0 : i32
    return %c0_i32, %c0_i32_0 : i32, i32
  }
  func.func @transform_4(%arg0: i32) -> (i32, i32) {
    %c0_i32 = arith.constant 0 : i32
    %c0_i32_0 = arith.constant 0 : i32
    return %arg0, %c0_i32 : i32, i32
  }
  func.func @transform_5(%arg0: i32) -> (i32, i32) {
    %c0_i32 = arith.constant 0 : i32
    %c0_i32_0 = arith.constant 0 : i32
    return %arg0, %c0_i32 : i32, i32
  }
}

</mosaic_0001>

<bundles_post_ra>
// kernel: tpu_custom_call.1
= control target key start
LH: loop header
LB: loop body
LE: loop exit
PB: predicated region body
PF: predicated region fallthrough
CT: control target
= control target key end

     0   :  { %s297_s0 = inlined_call_operand.hbm [shape: f32[8,32], index: 0, kind: input, shape index: {}]   ;;  %s298_s1 = inlined_call_operand.vmem [shape: f32[1,32], index: 1, kind: input, shape index: {}]   ;;  %s299_s2 = inlined_call_operand.vmem [shape: f32[1,32], index: 2, kind: input, shape index: {}]   ;;  %s300_s3 = inlined_call_operand.<no memory space> [shape: f32[1,1], index: 3, kind: input, shape index: {}]   ;;  %s301_s4 = inlined_call_operand.hbm [shape: f32[8,32], index: 4, kind: output, shape index: {0}]   ;;  %s302_s5 = inlined_call_operand.vmem [shape: f32[8,1], index: 5, kind: output, shape index: {1}]  }
   0x1   :  { %v11_v0 = vstv %s300_s3 }
   0x2   :  { %12 = vst [vmem:[#allocation2] sm:$0x1] %v11_v0 }
   0x3   :  { %13 = vsyncpa [#allocation4], 0 }
   0x4   :  { %14 = vsyncpa [#allocation5], 0  ;;  %s206_s20 = smov [#allocation3]   ;;  %s158_s24 = scalar_lea.hbm %s297_s0, 128 }
   0x5   :  { %s21_s21 = sshll.u32 %s206_s20, 4  ;;  %p159_p0 = scmp.ne.s32.totalorder %s297_s0, %s158_s24  ;;  %s22_s21 = int_to_ptr.vmem [resolvable:$true] %s21_s21 }
   0x6   :  { %p162_p1 = scmp.lt.u32.totalorder %s158_s24, %s297_s0 }
   0x8   :  { %p164_p2 = pnand %p162_p1, %p159_p0 }
   0xa   :  { %167 = shalt.err (!%p164_p2)
}
   0xb   :  { %s168_s3 = scalar_lea.vmem %s22_s21, 128  ;;  %p173_p4 = scmp.lt.s32.totalorder %s22_s21, %s22_s21 }
   0xc   :  { %p169_p3 = scmp.ne.s32.totalorder %s22_s21, %s168_s3  ;;  %p174_p5 = scmp.lt.s32.totalorder %s168_s3, %s168_s3 }
   0xe   :  { %p175_p6 = por %p174_p5, %p173_p4 }
  0x10   :  { %p176_p7 = pnand %p175_p6, %p169_p3 }
  0x12   :  { %179 = shalt.err (!%p176_p7)
}
  0x13   :  { %24 = dma.hbm_to_vmem [thread:$0]  %s297_s0, 128, %s22_s21, [#allocation4]  }
  0x14   :  { %202 = dma.done.wait [#allocation4], 128  }
  0x15   :  { %203 = vsyncadd [#allocation4], 4294967168  ;;  %v72_v1 = vlaneseq  ;;  %v256_v4 = vld [vmem:[#allocation3] sm:$0xff]  ;;  %v261_v5 = vld [vmem:[%s299_s2] sm:$0x1]  ;;  %vm78_vm0 = vcmask 261120  }
  0x16   :  { %v266_v6 = vld [vmem:[%s298_s1] sm:$0x1]  ;;  %v62_v8 = vmul.f32 %v261_v5, %v261_v5  ;;  %vm39_vm1 = vcmask 253952   ;;  %v207_v14 = vmov 0   ;;  %vm120_vm4 = vcmask 7168   ;;  %s208_s2 = smov [#allocation6]  }
  0x17   :  { %v73_v2 = vshrl.u32 %v72_v1, 7  ;;  %v38_v10 = vmul.f32 %v261_v5, %v266_v6  ;;  %146 = vset.pattern.permute.xlu1 %v207_v14  ;;  %147 = vset.pattern.permute.xlu0 %v207_v14  ;;  %v142_v15 = vld [vmem:[#allocation2] ss:$0 sm:$0xff]  ;;  %s128_s10 = sshll.u32 %s208_s2, 4  ;;  %s129_s10 = int_to_ptr.vmem [resolvable:$true] %s128_s10 }
  0x18   :  { %v63_v11 = vsel %vm39_vm1, %v62_v8, 0.0  ;;  %p185_p9 = scmp.lt.s32.totalorder %s129_s10, %s129_s10 }
  0x19   :  { %v254_v3 = vsub.s32 0, %v73_v2  ;;  %64 = vadd.xlane.f32.xlu1 %v63_v11  ;;  %v40_v13 = vsel %vm39_vm1, %v38_v10, 0.0 }
  0x1b   :  { %v75_v7 = vrot.slane %v261_v5, %v254_v3 }
  0x1d   :  { %v77_v9 = vmul.f32 %v75_v7, %v256_v4 }
  0x1f   :  { %v79_v12 = vsel %vm78_vm0, %v77_v9, 0.0 }
  0x20   :  { %80 = vadd.xlane.f32.xlu0 %v79_v12 }
  0x24   :  { %41 = vadd.xlane.f32.xlu0 %v40_v13 }
  0xa6   :  { %v65_v49 = vpop.xlane.xlu1 %64 }
  0xad   :  { %v81_v16 = vpop.xlane.xlu0 %80 }
  0xae   :  { %v88_v17 = vadd.f32 %v142_v15, %v81_v16 }
  0xb0   :  { %148 = vtanh.f32 %v88_v17 }
  0xb1   :  { %v42_v18 = vpop.xlane.xlu0 %41 }
  0xb2   :  { %v46_v19 = vand.u32 2147483647, %v42_v18  ;;  %v43_v30 = vmax.f32 %v42_v18, 0.0  ;;  %vm44_vm3 = vcmp.ne.f32.partialorder %v42_v18, %v42_v18 }
  0xb4   :  { %v47_v20 = vsub.f32 0.0, %v46_v19 }
  0xb6   :  { %v48_v21 = vmul.f32 1.442695, %v47_v20 }
  0xb8   :  { %150 = vpow2.f32 %v48_v21 }
  0xba   :  { %v149_v22 = vpop.eup %148 }
  0xbb   :  { %98 = vperm.xlu1 %146, %v149_v22   ;;  %v104_v34 = vmul.f32 %v149_v22, %v149_v22 }
  0xbd   :  { %v105_v37 = vsub.f32 1.0, %v104_v34 }
  0xc2   :  { %v151_v23 = vpop.eup %150 }
  0xc3   :  { %v50_v24 = vadd.f32 1.0, %v151_v23  ;;  %v53_v25 = vmul.f32 -0.5, %v151_v23  ;;  %v56_v27 = vand.u32 2147483647, %v151_v23 }
  0xc5   :  { %152 = vlog2.f32 %v50_v24  ;;  %v54_v26 = vadd.f32 1.0, %v53_v25  ;;  %vm57_vm2 = vcmp.lt.f32.partialorder %v56_v27, 0.0004427343 }
  0xc7   :  { %v55_v28 = vmul.f32 %v151_v23, %v54_v26 }
  0xcf   :  { %v153_v29 = vpop.eup %152 }
  0xd0   :  { %v52_v31 = vmul.f32 0.6931472, %v153_v29 }
  0xd2   :  { %v58_v32 = vsel %vm57_vm2, %v55_v28, %v52_v31 }
  0xd3   :  { %v59_v33 = vadd.f32 %v58_v32, %v43_v30 }
  0xd5   :  { %v60_v35 = vsel %vm44_vm3, %v42_v18, %v59_v33 }
  0xd6   :  { %v141_v36 = vadd.f32 -1.0, %v60_v35 }
  0xd8   :  { %v66_v38 = vsub.f32 %v141_v36, %v42_v18  ;;  %v109_v39 = vrot.slane %v141_v36, %v254_v3 }
  0xda   :  { %v110_v40 = vmul.f32 %v109_v39, %v105_v37  ;;  %v67_v50 = vmul.f32 %v66_v38, %v261_v5 }
  0xdc   :  { %v111_v41 = vadd.f32 1.0, %v110_v40  ;;  %v114_v42 = vmul.f32 -0.5, %v110_v40  ;;  %v117_v44 = vand.u32 2147483647, %v110_v40 }
  0xde   :  { %154 = vlog2.f32 %v111_v41  ;;  %v115_v43 = vadd.f32 1.0, %v114_v42  ;;  %vm118_vm5 = vcmp.lt.f32.partialorder %v117_v44, 0.0004427343 }
  0xdf   :  { %156 = vrcp.f32 %v65_v49 }
  0xe0   :  { %v116_v47 = vmul.f32 %v115_v43, %v110_v40 }
  0xe8   :  { %v155_v45 = vpop.eup %154 }
  0xe9   :  { %v113_v46 = vmul.f32 0.6931472, %v155_v45  ;;  %v157_v51 = vpop.eup %156 }
  0xea   :  { %v69_v52 = vmul.f32 %v157_v51, %v67_v50 }
  0xeb   :  { %v119_v48 = vsel %vm118_vm5, %v116_v47, %v113_v46 }
  0xec   :  { %121 = vst.msk [vmem:[%s302_s5] sm:$0xff] %vm120_vm4, %v119_v48  ;;  %v70_v53 = vadd.f32 %v69_v52, %v266_v6  ;;  %s180_s5 = scalar_lea.vmem %s129_s10, 128 }
  0xed   :  { %p181_p8 = scmp.ne.s32.totalorder %s129_s10, %s180_s5  ;;  %p186_p10 = scmp.lt.s32.totalorder %s180_s5, %s180_s5 }
  0xee   :  { %v94_v54 = vrot.slane %v70_v53, %v254_v3 }
  0xef   :  { %p187_p11 = por %p186_p10, %p185_p9 }
  0xf1   :  { %p188_p12 = pnand %p187_p11, %p181_p8 }
 0x13a   :  { %v99_v55 = vpop.permute.xlu1 %98 }
 0x13b   :  { %v101_v56 = vmul.f32 %v99_v55, %v94_v54 }
 0x13d   :  { %v102_v57 = vadd.f32 %v101_v56, %v256_v4 }
 0x13f   :  { %103 = vst.msk [vmem:[#allocation6] sm:$0xff] %vm78_vm0, %v102_v57 }
 0x140   :  { %191 = shalt.err (!%p188_p12)
}
 0x141   :  { %s192_s13 = scalar_lea.hbm %s301_s4, 128 }
 0x142   :  { %p193_p13 = scmp.ne.s32.totalorder %s301_s4, %s192_s13  ;;  %p196_p0 = scmp.lt.u32.totalorder %s192_s13, %s301_s4 }
 0x144   :  { %p198_p1 = pnand %p196_p0, %p193_p13 }
 0x146   :  { %201 = shalt.err (!%p198_p1)
}
 0x147   :  { %131 = dma.vmem_to_hbm [thread:$0]  %s129_s10, 128, %s301_s4, [#allocation5]  }
 0x148   :  { %204 = dma.done.wait [#allocation5], 128  }
 0x149   :  { %205 = vsyncadd [#allocation5], 4294967168 }
 0x14a   :  { %139 = vsyncpa [#allocation4], 1 }
 0x14b   :  { %140 = vsyncpa [#allocation5], 1 }

</bundles_post_ra>
